<compile_context>
chip_gen: v6e
topology: v6e:2x2x1
jax: 0.10.0
libtpu: 0.0.40
codegen_flags: <defaults>
</compile_context>

<pallas_src>
import jax
import jax.numpy as jnp
from jax.experimental import pallas as pl
from jax.experimental.pallas import tpu as pltpu


def decoder_kernel(
    emb_ref, hid_ref, enc_ref, mask_ref,
    wa_h_ref, wa_e_ref, ba_ref, v_ref,
    wih_ref, whh_ref, bih_ref, bhh_ref,
    wfc_ref, bfc_ref,
    logits_ref, hnew_out_ref, attn_out_ref,
    hnew_acc,
):
    S, Bp, E = enc_ref.shape
    H = hid_ref.shape[1]

    # ---- attention + GRU: computed once, result kept in VMEM scratch ----------
    @pl.when(pl.program_id(0) == 0)
    def _attention_and_gru():
        emb = emb_ref[...]                # [Bp, EMB]
        hid = hid_ref[...]                # [Bp, H]
        enc = enc_ref[...]                # [S, Bp, E]  native layout (no wrapper transpose)
        mask = mask_ref[...]              # [Bp, S] int32

        # Bahdanau attention, batched; softmax kept lane-dense on [Bp, S].
        h_proj = jnp.dot(hid, wa_h_ref[...],
                         preferred_element_type=jnp.float32)             # [Bp, A]
        e_proj = jnp.dot(enc.reshape(S * Bp, E), wa_e_ref[...],
                         preferred_element_type=jnp.float32)             # [S*Bp, A]
        A = e_proj.shape[-1]
        e_proj = e_proj.reshape(S, Bp, A)
        energy = jnp.tanh(e_proj + h_proj[None] + ba_ref[...][None])     # [S, Bp, A]
        scores = jnp.sum(energy * v_ref[...][None], axis=-1)             # [S, Bp]
        scores = scores.T                                                # [Bp, S]
        scores = jnp.where(mask == 0, -1e10, scores)
        scores = scores - jnp.max(scores, axis=-1, keepdims=True)
        ex = jnp.exp(scores)
        # TODO(synk): pl.reciprocal(sum, approx=True) would move the divide to the EUP.
        attn = ex / jnp.sum(ex, axis=-1, keepdims=True)                  # [Bp, S]

        # whole-block, lane-dense store of the attention weights
        S_out = attn_out_ref.shape[1]
        if S_out > S:
            attn_out_ref[...] = jnp.concatenate(
                [attn, jnp.zeros((Bp, S_out - S), jnp.float32)], axis=1)
        else:
            attn_out_ref[...] = attn

        # context = bmm(attn, enc) without materializing a transposed enc
        ctx = jnp.sum(attn.T[:, :, None] * enc, axis=0)                  # [Bp, E]

        # single GRU step (PyTorch gate order r, z, n); fused input matmul
        x = jnp.concatenate([emb, ctx], axis=1)                          # [Bp, EMB+E]
        gi = jnp.dot(x, wih_ref[...],
                     preferred_element_type=jnp.float32) + bih_ref[...]  # [Bp, 3H]
        gh = jnp.dot(hid, whh_ref[...],
                     preferred_element_type=jnp.float32) + bhh_ref[...]  # [Bp, 3H]
        r = jax.nn.sigmoid(gi[:, 0:H] + gh[:, 0:H])
        z = jax.nn.sigmoid(gi[:, H:2 * H] + gh[:, H:2 * H])
        n = jnp.tanh(gi[:, 2 * H:3 * H] + r * gh[:, 2 * H:3 * H])
        h_new = (1.0 - z) * n + z * hid                                  # [Bp, H]
        hnew_acc[...] = h_new

        H_out = hnew_out_ref.shape[1]
        if H_out > H:
            hnew_out_ref[...] = jnp.concatenate(
                [h_new, jnp.zeros((Bp, H_out - H), jnp.float32)], axis=1)
        else:
            hnew_out_ref[...] = h_new

    # ---- fc_out: one [Bp, H] @ [H, tO] slice per grid step (Wfc streamed) -----
    h_lo = hnew_acc[...].astype(wfc_ref.dtype)        # bf16 inputs, f32 accumulate
    logits_ref[...] = (jnp.dot(h_lo, wfc_ref[...],
                               preferred_element_type=jnp.float32)
                       + bfc_ref[...])


def decoder_forward(params, input_ids, hidden, encoder_outputs, mask):
    """input_ids [B] int32, hidden [1,B,H], encoder_outputs [S,B,E], mask [B,S]."""
    B = input_ids.shape[0]
    S, _, E = encoder_outputs.shape
    H = hidden.shape[2]
    EMB = params["embedding"].shape[1]
    A = params["Wa_h"].shape[1]
    O = params["b_fc"].shape[1]

    LANE, SUB = 128, 8
    B_pad = ((B + SUB - 1) // SUB) * SUB
    S_out = ((S + LANE - 1) // LANE) * LANE
    H_out = ((H + LANE - 1) // LANE) * LANE
    # vocab tile: multiple of 128, sized to fit comfortably in v7x's smaller VMEM
    tO = 512 if O >= 512 else ((O + LANE - 1) // LANE) * LANE
    nO = pl.cdiv(O, tO)
    O_pad = nO * tO

    # Glue: embedding gather + batch padding (dropout_p = 0 -> identity).
    emb = params["embedding"][input_ids]                       # [B, EMB]
    hid = hidden[0]                                            # [B, H]
    pb = B_pad - B
    emb_p = jnp.pad(emb, ((0, pb), (0, 0)))
    hid_p = jnp.pad(hid, ((0, pb), (0, 0)))
    enc_p = jnp.pad(encoder_outputs, ((0, 0), (0, pb), (0, 0)))  # native [S, B_pad, E]
    mask_p = jnp.pad(mask.astype(jnp.int32), ((0, pb), (0, 0)))  # padded rows fully masked

    # Pad fc_out to the tiled, lane-aligned vocab (production: store pre-padded).
    wfc = jnp.pad(params["Wfc"], ((0, 0), (0, O_pad - O)))       # bf16 [H, O_pad]
    bfc = jnp.pad(params["b_fc"], ((0, 0), (0, O_pad - O)))      # f32  [1, O_pad]

    cost = pl.CostEstimate(
        flops=2 * B_pad * (H * O_pad + (EMB + E) * 3 * H + H * 3 * H
                           + S * E * A + H * A),
        transcendentals=B_pad * (S * A + S + 3 * H),
        bytes_accessed=(wfc.size * wfc.dtype.itemsize
                        + (params["Wih"].size + params["Whh"].size) * 4
                        + enc_p.size * 4 + B_pad * O_pad * 4),
    )

    grid_spec = pltpu.PrefetchScalarGridSpec(
        num_scalar_prefetch=0,
        grid=(nO,),
        in_specs=[
            pl.BlockSpec((B_pad, EMB), lambda j: (0, 0)),       # emb
            pl.BlockSpec((B_pad, H), lambda j: (0, 0)),         # hidden
            pl.BlockSpec((S, B_pad, E), lambda j: (0, 0, 0)),   # encoder outputs (native)
            pl.BlockSpec((B_pad, S), lambda j: (0, 0)),         # mask
            pl.BlockSpec((H, A), lambda j: (0, 0)),             # Wa_h
            pl.BlockSpec((E, A), lambda j: (0, 0)),             # Wa_e
            pl.BlockSpec((1, A), lambda j: (0, 0)),             # b_a
            pl.BlockSpec((1, A), lambda j: (0, 0)),             # v
            pl.BlockSpec((EMB + E, 3 * H), lambda j: (0, 0)),   # Wih (fused)
            pl.BlockSpec((H, 3 * H), lambda j: (0, 0)),         # Whh
            pl.BlockSpec((1, 3 * H), lambda j: (0, 0)),         # b_ih
            pl.BlockSpec((1, 3 * H), lambda j: (0, 0)),         # b_hh
            pl.BlockSpec((H, tO), lambda j: (0, j)),            # Wfc streamed over vocab
            pl.BlockSpec((1, tO), lambda j: (0, j)),            # b_fc streamed over vocab
        ],
        out_specs=(
            pl.BlockSpec((B_pad, tO), lambda j: (0, j)),        # logits tile
            pl.BlockSpec((B_pad, H_out), lambda j: (0, 0)),     # h_new (lane-padded)
            pl.BlockSpec((B_pad, S_out), lambda j: (0, 0)),     # attn  (lane-padded)
        ),
        scratch_shapes=[pltpu.VMEM((B_pad, H), jnp.float32)],
    )

    logits_p, hnew_p, attn_p = pl.pallas_call(
        decoder_kernel,
        out_shape=(
            jax.ShapeDtypeStruct((B_pad, O_pad), jnp.float32),
            jax.ShapeDtypeStruct((B_pad, H_out), jnp.float32),
            jax.ShapeDtypeStruct((B_pad, S_out), jnp.float32),
        ),
        grid_spec=grid_spec,
        compiler_params=pltpu.CompilerParams(
            dimension_semantics=("arbitrary",),
            vmem_limit_bytes=32 * 1024 * 1024,
        ),
        cost_estimate=cost,
    )(
        emb_p, hid_p, enc_p, mask_p,
        params["Wa_h"], params["Wa_e"], params["b_a"], params["v"],
        params["Wih"], params["Whh"], params["b_ih"], params["b_hh"],
        wfc, bfc,
    )

    logits = logits_p[:B, :O]
    h_new = hnew_p[:B, :H]
    attn = attn_p[:B, :S]
    return logits, h_new[None], attn                   # [B,O], [1,B,H], [B,S]


def init_params(key, output_dim, emb_dim, enc_hid, dec_hid, attn_dim):
    H, E, EMB, A, O = dec_hid, enc_hid, emb_dim, attn_dim, output_dim
    ks = jax.random.split(key, 10)
    u = lambda k, shape, s: jax.random.uniform(k, shape, jnp.float32, -s, s)
    p = {}
    p["embedding"] = jax.random.normal(ks[0], (O, EMB), jnp.float32)
    # attention: Linear(H + E -> A)   (cat order = (hidden, encoder_outputs))
    s = 1.0 / jnp.sqrt(H + E)
    Wa = u(ks[1], (A, H + E), s)               # PyTorch (out, in)
    p["Wa_h"] = Wa[:, :H].T                    # [H, A]
    p["Wa_e"] = Wa[:, H:].T                    # [E, A]
    p["b_a"] = u(ks[2], (1, A), s)
    p["v"] = u(ks[3], (1, A), 1.0 / jnp.sqrt(A))
    # GRU(EMB + E -> H): weight_ih [3H, EMB+E], pre-transposed and pre-fused so the
    # kernel does one matmul on [emb | ctx].
    s = 1.0 / jnp.sqrt(H)
    Wih = u(ks[4], (3 * H, EMB + E), s)
    p["Wih"] = Wih.T                           # [EMB+E, 3H]
    p["Whh"] = u(ks[5], (3 * H, H), s).T       # [H, 3H]
    p["b_ih"] = u(ks[6], (1, 3 * H), s)
    p["b_hh"] = u(ks[7], (1, 3 * H), s)
    # fc_out: Linear(H -> O); weight kept in bf16 (the dominant HBM stream)
    p["Wfc"] = u(ks[8], (O, H), s).T.astype(jnp.bfloat16)   # [H, O] bf16
    p["b_fc"] = u(ks[9], (1, O), s)                          # f32
    return p


def decoder_reference(params, input_ids, hidden, encoder_outputs, mask):
    """Pure-JAX reference (same math, no Pallas) for correctness checking."""
    emb = params["embedding"][input_ids]
    hid = hidden[0]
    enc = jnp.transpose(encoder_outputs, (1, 0, 2))     # [B, S, E]
    H = hid.shape[1]
    h_proj = hid @ params["Wa_h"]
    e_proj = jnp.einsum("bse,ea->bsa", enc, params["Wa_e"])
    energy = jnp.tanh(e_proj + h_proj[:, None, :] + params["b_a"][None])
    scores = jnp.sum(energy * params["v"][None], axis=-1)
    scores = jnp.where(mask == 0.0, -1e10, scores)
    attn = jax.nn.softmax(scores, axis=1)
    ctx = jnp.einsum("bs,bse->be", attn, enc)
    x = jnp.concatenate([emb, ctx], axis=1)
    gi = x @ params["Wih"] + params["b_ih"]
    gh = hid @ params["Whh"] + params["b_hh"]
    r = jax.nn.sigmoid(gi[:, :H] + gh[:, :H])
    z = jax.nn.sigmoid(gi[:, H:2 * H] + gh[:, H:2 * H])
    n = jnp.tanh(gi[:, 2 * H:] + r * gh[:, 2 * H:])
    h_new = (1.0 - z) * n + z * hid
    logits = (jnp.dot(h_new.astype(jnp.bfloat16), params["Wfc"],
                      preferred_element_type=jnp.float32) + params["b_fc"])
    return logits, h_new[None], attn


if __name__ == "__main__":
    OUTPUT_DIM, EMB_DIM, ENC_HID, DEC_HID, ATTN_DIM = 64, 16, 32, 32, 32
    B, S = 2, 8

    key = jax.random.PRNGKey(0)
    pkey, ikey, hkey, ekey = jax.random.split(key, 4)
    params = init_params(pkey, OUTPUT_DIM, EMB_DIM, ENC_HID, DEC_HID, ATTN_DIM)

    input_ids = jax.random.randint(ikey, (B,), 0, OUTPUT_DIM)                # [B]
    hidden = jax.random.normal(hkey, (1, B, DEC_HID), jnp.float32)           # [1, B, H]
    encoder_outputs = jax.random.normal(ekey, (S, B, ENC_HID), jnp.float32)  # [S, B, E]
    mask = jnp.ones((B, S), jnp.float32).at[1, 5:].set(0.0)                  # ragged src lens

    fwd = jax.jit(decoder_forward)
    logits, hidden_out, attn_w = fwd(params, input_ids, hidden, encoder_outputs, mask)
    jax.block_until_ready((logits, hidden_out, attn_w))

    # shape / semantics checks against the pure-JAX reference
    ref_logits, ref_hidden, ref_attn = decoder_reference(
        params, input_ids, hidden, encoder_outputs, mask)
    assert logits.shape == (B, OUTPUT_DIM)
    assert hidden_out.shape == (1, B, DEC_HID)
    assert attn_w.shape == (B, S)
    assert jnp.allclose(attn_w, ref_attn, atol=5e-4, rtol=1e-3)
    assert jnp.allclose(hidden_out, ref_hidden, atol=5e-4, rtol=1e-3)
    # fc_out runs with bf16 weights/activations (f32 accumulation) -> looser bound
    assert jnp.allclose(logits, ref_logits, atol=2e-2, rtol=2e-2)

    print("KERNEL_OK")
</pallas_src>

<mosaic_0001>
module attributes {stable_mosaic.version = 11 : i64} {
  func.func @decoder_kernel(%arg0: i32, %arg1: memref<8x16xf32, #tpu.memory_space<vmem>>, %arg2: memref<8x32xf32, #tpu.memory_space<vmem>>, %arg3: memref<8x8x32xf32, #tpu.memory_space<vmem>>, %arg4: memref<8x8xi32, #tpu.memory_space<vmem>>, %arg5: memref<32x32xf32, #tpu.memory_space<vmem>>, %arg6: memref<32x32xf32, #tpu.memory_space<vmem>>, %arg7: memref<1x32xf32, #tpu.memory_space<vmem>>, %arg8: memref<1x32xf32, #tpu.memory_space<vmem>>, %arg9: memref<48x96xf32, #tpu.memory_space<vmem>>, %arg10: memref<32x96xf32, #tpu.memory_space<vmem>>, %arg11: memref<1x96xf32, #tpu.memory_space<vmem>>, %arg12: memref<1x96xf32, #tpu.memory_space<vmem>>, %arg13: memref<32x128xbf16, #tpu.memory_space<vmem>>, %arg14: memref<1x128xf32, #tpu.memory_space<vmem>>, %arg15: memref<8x128xf32, #tpu.memory_space<vmem>>, %arg16: memref<8x128xf32, #tpu.memory_space<vmem>>, %arg17: memref<8x128xf32, #tpu.memory_space<vmem>>, %arg18: memref<8x32xf32, #tpu.memory_space<vmem>>) attributes {dimension_semantics = [#tpu.dimension_semantics<arbitrary>], iteration_bounds = array<i64: 1>, scalar_prefetch = 0 : i64, scratch_operands = 1 : i64, tpu.core_type = #tpu.core_type<tc>, window_params = [{pipeline_mode = #tpu.pipeline_mode<synchronous>, transform_indices = @transform_0, window_bounds = array<i64: 8, 16>}, {pipeline_mode = #tpu.pipeline_mode<synchronous>, transform_indices = @transform_1, window_bounds = array<i64: 8, 32>}, {pipeline_mode = #tpu.pipeline_mode<synchronous>, transform_indices = @transform_2, window_bounds = array<i64: 8, 8, 32>}, {pipeline_mode = #tpu.pipeline_mode<synchronous>, transform_indices = @transform_3, window_bounds = array<i64: 8, 8>}, {pipeline_mode = #tpu.pipeline_mode<synchronous>, transform_indices = @transform_4, window_bounds = array<i64: 32, 32>}, {pipeline_mode = #tpu.pipeline_mode<synchronous>, transform_indices = @transform_5, window_bounds = array<i64: 32, 32>}, {pipeline_mode = #tpu.pipeline_mode<synchronous>, transform_indices = @transform_6, window_bounds = array<i64: 1, 32>}, {pipeline_mode = #tpu.pipeline_mode<synchronous>, transform_indices = @transform_7, window_bounds = array<i64: 1, 32>}, {pipeline_mode = #tpu.pipeline_mode<synchronous>, transform_indices = @transform_8, window_bounds = array<i64: 48, 96>}, {pipeline_mode = #tpu.pipeline_mode<synchronous>, transform_indices = @transform_9, window_bounds = array<i64: 32, 96>}, {pipeline_mode = #tpu.pipeline_mode<synchronous>, transform_indices = @transform_10, window_bounds = array<i64: 1, 96>}, {pipeline_mode = #tpu.pipeline_mode<synchronous>, transform_indices = @transform_11, window_bounds = array<i64: 1, 96>}, {transform_indices = @transform_12, window_bounds = array<i64: 32, 128>}, {transform_indices = @transform_13, window_bounds = array<i64: 1, 128>}, {transform_indices = @transform_14, window_bounds = array<i64: 8, 128>}, {pipeline_mode = #tpu.pipeline_mode<synchronous>, transform_indices = @transform_15, window_bounds = array<i64: 8, 128>}, {pipeline_mode = #tpu.pipeline_mode<synchronous>, transform_indices = @transform_16, window_bounds = array<i64: 8, 128>}]} {
    %c0_i32 = arith.constant 0 : i32
    %0 = arith.cmpi eq, %arg0, %c0_i32 : i32
    %1 = arith.extui %0 : i1 to i32
    %c0_i32_0 = arith.constant 0 : i32
    %2 = arith.cmpi ne, %1, %c0_i32_0 : i32
    scf.if %2 {
      %c0_8 = arith.constant 0 : index
      %c0_9 = arith.constant 0 : index
      %11 = vector.load %arg1[%c0_8, %c0_9] : memref<8x16xf32, #tpu.memory_space<vmem>>, vector<8x16xf32>
      %c0_10 = arith.constant 0 : index
      %c0_11 = arith.constant 0 : index
      %12 = vector.load %arg2[%c0_10, %c0_11] : memref<8x32xf32, #tpu.memory_space<vmem>>, vector<8x32xf32>
      %c0_12 = arith.constant 0 : index
      %c0_13 = arith.constant 0 : index
      %c0_14 = arith.constant 0 : index
      %13 = vector.load %arg3[%c0_12, %c0_13, %c0_14] : memref<8x8x32xf32, #tpu.memory_space<vmem>>, vector<8x8x32xf32>
      %c0_15 = arith.constant 0 : index
      %c0_16 = arith.constant 0 : index
      %14 = vector.load %arg4[%c0_15, %c0_16] : memref<8x8xi32, #tpu.memory_space<vmem>>, vector<8x8xi32>
      %c0_17 = arith.constant 0 : index
      %c0_18 = arith.constant 0 : index
      %15 = vector.load %arg5[%c0_17, %c0_18] : memref<32x32xf32, #tpu.memory_space<vmem>>, vector<32x32xf32>
      %cst_19 = arith.constant dense<0.000000e+00> : vector<8x32xf32>
      %16 = tpu.matmul %12, %15, %cst_19 {dimension_numbers = #tpu.dot_dimension_numbers<[1], [0], [0], [1], [0, 0, 1, 1], [], []>} : vector<8x32xf32>, vector<32x32xf32>, vector<8x32xf32> -> vector<8x32xf32>
      %17 = vector.shape_cast %13 : vector<8x8x32xf32> to vector<64x32xf32>
      %c0_20 = arith.constant 0 : index
      %c0_21 = arith.constant 0 : index
      %18 = vector.load %arg6[%c0_20, %c0_21] : memref<32x32xf32, #tpu.memory_space<vmem>>, vector<32x32xf32>
      %cst_22 = arith.constant dense<0.000000e+00> : vector<64x32xf32>
      %19 = tpu.matmul %17, %18, %cst_22 {dimension_numbers = #tpu.dot_dimension_numbers<[1], [0], [0], [1], [0, 0, 1, 1], [], []>} : vector<64x32xf32>, vector<32x32xf32>, vector<64x32xf32> -> vector<64x32xf32>
      %20 = vector.shape_cast %19 : vector<64x32xf32> to vector<8x8x32xf32>
      %21 = vector.shape_cast %16 : vector<8x32xf32> to vector<1x8x32xf32>
      %22 = vector.broadcast %21 : vector<1x8x32xf32> to vector<8x8x32xf32>
      %23 = arith.addf %20, %22 : vector<8x8x32xf32>
      %c0_23 = arith.constant 0 : index
      %c0_24 = arith.constant 0 : index
      %24 = vector.load %arg7[%c0_23, %c0_24] : memref<1x32xf32, #tpu.memory_space<vmem>>, vector<1x32xf32>
      %25 = vector.shape_cast %24 : vector<1x32xf32> to vector<1x1x32xf32>
      %26 = vector.broadcast %25 : vector<1x1x32xf32> to vector<8x8x32xf32>
      %27 = arith.addf %23, %26 : vector<8x8x32xf32>
      %28 = math.tanh %27 : vector<8x8x32xf32>
      %c0_25 = arith.constant 0 : index
      %c0_26 = arith.constant 0 : index
      %29 = vector.load %arg8[%c0_25, %c0_26] : memref<1x32xf32, #tpu.memory_space<vmem>>, vector<1x32xf32>
      %30 = vector.shape_cast %29 : vector<1x32xf32> to vector<1x1x32xf32>
      %31 = vector.broadcast %30 : vector<1x1x32xf32> to vector<8x8x32xf32>
      %32 = arith.mulf %28, %31 : vector<8x8x32xf32>
      %cst_27 = arith.constant dense<0.000000e+00> : vector<8x8xf32>
      %33 = vector.multi_reduction <add>, %32, %cst_27 [2] : vector<8x8x32xf32> to vector<8x8xf32>
      %34 = tpu.transpose %33, [1, 0] : vector<8x8xf32> -> vector<8x8xf32>
      %c0_i32_28 = arith.constant 0 : i32
      %35 = vector.broadcast %c0_i32_28 : i32 to vector<8x8xi32>
      %36 = arith.cmpi eq, %14, %35 : vector<8x8xi32>
      %cst_29 = arith.constant -1.000000e+10 : f32
      %37 = vector.broadcast %cst_29 : f32 to vector<8x8xf32>
      %38 = arith.select %36, %37, %34 : vector<8x8xi1>, vector<8x8xf32>
      %cst_30 = arith.constant dense<0xFF800000> : vector<8xf32>
      %39 = vector.multi_reduction <maximumf>, %38, %cst_30 [1] : vector<8x8xf32> to vector<8xf32>
      %40 = vector.shape_cast %39 : vector<8xf32> to vector<8x1xf32>
      %41 = vector.broadcast %40 : vector<8x1xf32> to vector<8x8xf32>
      %42 = arith.subf %38, %41 : vector<8x8xf32>
      %43 = math.exp %42 : vector<8x8xf32>
      %cst_31 = arith.constant dense<0.000000e+00> : vector<8xf32>
      %44 = vector.multi_reduction <add>, %43, %cst_31 [1] : vector<8x8xf32> to vector<8xf32>
      %45 = vector.shape_cast %44 : vector<8xf32> to vector<8x1xf32>
      %46 = vector.broadcast %45 : vector<8x1xf32> to vector<8x8xf32>
      %47 = arith.divf %43, %46 : vector<8x8xf32>
      %cst_32 = arith.constant 0.000000e+00 : f32
      %48 = vector.broadcast %cst_32 : f32 to vector<8x120xf32>
      %49 = tpu.concatenate %47, %48 in 1 : vector<8x8xf32>, vector<8x120xf32> -> vector<8x128xf32>
      %c0_33 = arith.constant 0 : index
      %c0_34 = arith.constant 0 : index
      %50 = vector.load %arg17[%c0_33, %c0_34] : memref<8x128xf32, #tpu.memory_space<vmem>>, vector<8x128xf32>
      tpu.vector_store %arg17[%c0_33, %c0_34], %49 {strides = array<i32>} : memref<8x128xf32, #tpu.memory_space<vmem>>, vector<8x128xf32>,
      %51 = tpu.transpose %47, [1, 0] : vector<8x8xf32> -> vector<8x8xf32>
      %52 = vector.shape_cast %51 : vector<8x8xf32> to vector<8x8x1xf32>
      %53 = vector.broadcast %52 : vector<8x8x1xf32> to vector<8x8x32xf32>
      %54 = arith.mulf %53, %13 : vector<8x8x32xf32>
      %cst_35 = arith.constant dense<0.000000e+00> : vector<8x32xf32>
      %55 = vector.multi_reduction <add>, %54, %cst_35 [0] : vector<8x8x32xf32> to vector<8x32xf32>
      %56 = tpu.concatenate %11, %55 in 1 : vector<8x16xf32>, vector<8x32xf32> -> vector<8x48xf32>
      %c0_36 = arith.constant 0 : index
      %c0_37 = arith.constant 0 : index
      %57 = vector.load %arg9[%c0_36, %c0_37] : memref<48x96xf32, #tpu.memory_space<vmem>>, vector<48x96xf32>
      %cst_38 = arith.constant dense<0.000000e+00> : vector<8x96xf32>
      %58 = tpu.matmul %56, %57, %cst_38 {dimension_numbers = #tpu.dot_dimension_numbers<[1], [0], [0], [1], [0, 0, 1, 1], [], []>} : vector<8x48xf32>, vector<48x96xf32>, vector<8x96xf32> -> vector<8x96xf32>
      %c0_39 = arith.constant 0 : index
      %c0_40 = arith.constant 0 : index
      %59 = vector.load %arg11[%c0_39, %c0_40] : memref<1x96xf32, #tpu.memory_space<vmem>>, vector<1x96xf32>
      %60 = vector.broadcast %59 : vector<1x96xf32> to vector<8x96xf32>
      %61 = arith.addf %58, %60 : vector<8x96xf32>
      %c0_41 = arith.constant 0 : index
      %c0_42 = arith.constant 0 : index
      %62 = vector.load %arg10[%c0_41, %c0_42] : memref<32x96xf32, #tpu.memory_space<vmem>>, vector<32x96xf32>
      %cst_43 = arith.constant dense<0.000000e+00> : vector<8x96xf32>
      %63 = tpu.matmul %12, %62, %cst_43 {dimension_numbers = #tpu.dot_dimension_numbers<[1], [0], [0], [1], [0, 0, 1, 1], [], []>} : vector<8x32xf32>, vector<32x96xf32>, vector<8x96xf32> -> vector<8x96xf32>
      %c0_44 = arith.constant 0 : index
      %c0_45 = arith.constant 0 : index
      %64 = vector.load %arg12[%c0_44, %c0_45] : memref<1x96xf32, #tpu.memory_space<vmem>>, vector<1x96xf32>
      %65 = vector.broadcast %64 : vector<1x96xf32> to vector<8x96xf32>
      %66 = arith.addf %63, %65 : vector<8x96xf32>
      %67 = vector.extract_strided_slice %61 {offsets = [0, 0], sizes = [8, 32], strides = [1, 1]} : vector<8x96xf32> to vector<8x32xf32>
      %68 = vector.extract_strided_slice %66 {offsets = [0, 0], sizes = [8, 32], strides = [1, 1]} : vector<8x96xf32> to vector<8x32xf32>
      %69 = arith.addf %67, %68 : vector<8x32xf32>
      %70 = arith.negf %69 : vector<8x32xf32>
      %71 = math.exp %70 : vector<8x32xf32>
      %cst_46 = arith.constant 1.000000e+00 : f32
      %72 = vector.broadcast %cst_46 : f32 to vector<8x32xf32>
      %73 = arith.addf %72, %71 : vector<8x32xf32>
      %74 = arith.divf %72, %73 : vector<8x32xf32>
      %75 = vector.extract_strided_slice %61 {offsets = [0, 32], sizes = [8, 32], strides = [1, 1]} : vector<8x96xf32> to vector<8x32xf32>
      %76 = vector.extract_strided_slice %66 {offsets = [0, 32], sizes = [8, 32], strides = [1, 1]} : vector<8x96xf32> to vector<8x32xf32>
      %77 = arith.addf %75, %76 : vector<8x32xf32>
      %78 = arith.negf %77 : vector<8x32xf32>
      %79 = math.exp %78 : vector<8x32xf32>
      %cst_47 = arith.constant 1.000000e+00 : f32
      %80 = vector.broadcast %cst_47 : f32 to vector<8x32xf32>
      %81 = arith.addf %80, %79 : vector<8x32xf32>
      %82 = arith.divf %80, %81 : vector<8x32xf32>
      %83 = vector.extract_strided_slice %61 {offsets = [0, 64], sizes = [8, 32], strides = [1, 1]} : vector<8x96xf32> to vector<8x32xf32>
      %84 = vector.extract_strided_slice %66 {offsets = [0, 64], sizes = [8, 32], strides = [1, 1]} : vector<8x96xf32> to vector<8x32xf32>
      %85 = arith.mulf %74, %84 : vector<8x32xf32>
      %86 = arith.addf %83, %85 : vector<8x32xf32>
      %87 = math.tanh %86 : vector<8x32xf32>
      %cst_48 = arith.constant 1.000000e+00 : f32
      %88 = vector.broadcast %cst_48 : f32 to vector<8x32xf32>
      %89 = arith.subf %88, %82 : vector<8x32xf32>
      %90 = arith.mulf %89, %87 : vector<8x32xf32>
      %91 = arith.mulf %82, %12 : vector<8x32xf32>
      %92 = arith.addf %90, %91 : vector<8x32xf32>
      %c0_49 = arith.constant 0 : index
      %c0_50 = arith.constant 0 : index
      %93 = vector.load %arg18[%c0_49, %c0_50] : memref<8x32xf32, #tpu.memory_space<vmem>>, vector<8x32xf32>
      tpu.vector_store %arg18[%c0_49, %c0_50], %92 {strides = array<i32>} : memref<8x32xf32, #tpu.memory_space<vmem>>, vector<8x32xf32>,
      %cst_51 = arith.constant 0.000000e+00 : f32
      %94 = vector.broadcast %cst_51 : f32 to vector<8x96xf32>
      %95 = tpu.concatenate %92, %94 in 1 : vector<8x32xf32>, vector<8x96xf32> -> vector<8x128xf32>
      %c0_52 = arith.constant 0 : index
      %c0_53 = arith.constant 0 : index
      %96 = vector.load %arg16[%c0_52, %c0_53] : memref<8x128xf32, #tpu.memory_space<vmem>>, vector<8x128xf32>
      tpu.vector_store %arg16[%c0_52, %c0_53], %95 {strides = array<i32>} : memref<8x128xf32, #tpu.memory_space<vmem>>, vector<8x128xf32>,
    } else {
    }
    %c0 = arith.constant 0 : index
    %c0_1 = arith.constant 0 : index
    %3 = vector.load %arg18[%c0, %c0_1] : memref<8x32xf32, #tpu.memory_space<vmem>>, vector<8x32xf32>
    %4 = arith.truncf %3 : vector<8x32xf32> to vector<8x32xbf16>
    %c0_2 = arith.constant 0 : index
    %c0_3 = arith.constant 0 : index
    %5 = vector.load %arg13[%c0_2, %c0_3] : memref<32x128xbf16, #tpu.memory_space<vmem>>, vector<32x128xbf16>
    %cst = arith.constant dense<0.000000e+00> : vector<8x128xf32>
    %6 = tpu.matmul %4, %5, %cst {dimension_numbers = #tpu.dot_dimension_numbers<[1], [0], [0], [1], [0, 0, 1, 1], [], []>} : vector<8x32xbf16>, vector<32x128xbf16>, vector<8x128xf32> -> vector<8x128xf32>
    %c0_4 = arith.constant 0 : index
    %c0_5 = arith.constant 0 : index
    %7 = vector.load %arg14[%c0_4, %c0_5] : memref<1x128xf32, #tpu.memory_space<vmem>>, vector<1x128xf32>
    %8 = vector.broadcast %7 : vector<1x128xf32> to vector<8x128xf32>
    %9 = arith.addf %6, %8 : vector<8x128xf32>
    %c0_6 = arith.constant 0 : index
    %c0_7 = arith.constant 0 : index
    %10 = vector.load %arg15[%c0_6, %c0_7] : memref<8x128xf32, #tpu.memory_space<vmem>>, vector<8x128xf32>
    tpu.vector_store %arg15[%c0_6, %c0_7], %9 {strides = array<i32>} : memref<8x128xf32, #tpu.memory_space<vmem>>, vector<8x128xf32>,
    return
  }
  func.func @transform_0(%arg0: i32) -> (i32, i32) {
    %c0_i32 = arith.constant 0 : i32
    %c0_i32_0 = arith.constant 0 : i32
    %c0_i32_1 = arith.constant 0 : i32
    return %c0_i32, %c0_i32_0 : i32, i32
  }
  func.func @transform_1(%arg0: i32) -> (i32, i32) {
    %c0_i32 = arith.constant 0 : i32
    %c0_i32_0 = arith.constant 0 : i32
    %c0_i32_1 = arith.constant 0 : i32
    return %c0_i32, %c0_i32_0 : i32, i32
  }
  func.func @transform_2(%arg0: i32) -> (i32, i32, i32) {
    %c0_i32 = arith.constant 0 : i32
    %c0_i32_0 = arith.constant 0 : i32
    %c0_i32_1 = arith.constant 0 : i32
    %c0_i32_2 = arith.constant 0 : i32
    return %c0_i32, %c0_i32_0, %c0_i32_1 : i32, i32, i32
  }
  func.func @transform_3(%arg0: i32) -> (i32, i32) {
    %c0_i32 = arith.constant 0 : i32
    %c0_i32_0 = arith.constant 0 : i32
    %c0_i32_1 = arith.constant 0 : i32
    return %c0_i32, %c0_i32_0 : i32, i32
  }
  func.func @transform_4(%arg0: i32) -> (i32, i32) {
    %c0_i32 = arith.constant 0 : i32
    %c0_i32_0 = arith.constant 0 : i32
    %c0_i32_1 = arith.constant 0 : i32
    return %c0_i32, %c0_i32_0 : i32, i32
  }
  func.func @transform_5(%arg0: i32) -> (i32, i32) {
    %c0_i32 = arith.constant 0 : i32
    %c0_i32_0 = arith.constant 0 : i32
    %c0_i32_1 = arith.constant 0 : i32
    return %c0_i32, %c0_i32_0 : i32, i32
  }
  func.func @transform_6(%arg0: i32) -> (i32, i32) {
    %c0_i32 = arith.constant 0 : i32
    %c0_i32_0 = arith.constant 0 : i32
    %c0_i32_1 = arith.constant 0 : i32
    return %c0_i32, %c0_i32_0 : i32, i32
  }
  func.func @transform_7(%arg0: i32) -> (i32, i32) {
    %c0_i32 = arith.constant 0 : i32
    %c0_i32_0 = arith.constant 0 : i32
    %c0_i32_1 = arith.constant 0 : i32
    return %c0_i32, %c0_i32_0 : i32, i32
  }
  func.func @transform_8(%arg0: i32) -> (i32, i32) {
    %c0_i32 = arith.constant 0 : i32
    %c0_i32_0 = arith.constant 0 : i32
    %c0_i32_1 = arith.constant 0 : i32
    return %c0_i32, %c0_i32_0 : i32, i32
  }
  func.func @transform_9(%arg0: i32) -> (i32, i32) {
    %c0_i32 = arith.constant 0 : i32
    %c0_i32_0 = arith.constant 0 : i32
    %c0_i32_1 = arith.constant 0 : i32
    return %c0_i32, %c0_i32_0 : i32, i32
  }
  func.func @transform_10(%arg0: i32) -> (i32, i32) {
    %c0_i32 = arith.constant 0 : i32
    %c0_i32_0 = arith.constant 0 : i32
    %c0_i32_1 = arith.constant 0 : i32
    return %c0_i32, %c0_i32_0 : i32, i32
  }
  func.func @transform_11(%arg0: i32) -> (i32, i32) {
    %c0_i32 = arith.constant 0 : i32
    %c0_i32_0 = arith.constant 0 : i32
    %c0_i32_1 = arith.constant 0 : i32
    return %c0_i32, %c0_i32_0 : i32, i32
  }
  func.func @transform_12(%arg0: i32) -> (i32, i32) {
    %c0_i32 = arith.constant 0 : i32
    %c0_i32_0 = arith.constant 0 : i32
    return %c0_i32, %arg0 : i32, i32
  }
  func.func @transform_13(%arg0: i32) -> (i32, i32) {
    %c0_i32 = arith.constant 0 : i32
    %c0_i32_0 = arith.constant 0 : i32
    return %c0_i32, %arg0 : i32, i32
  }
  func.func @transform_14(%arg0: i32) -> (i32, i32) {
    %c0_i32 = arith.constant 0 : i32
    %c0_i32_0 = arith.constant 0 : i32
    return %c0_i32, %arg0 : i32, i32
  }
  func.func @transform_15(%arg0: i32) -> (i32, i32) {
    %c0_i32 = arith.constant 0 : i32
    %c0_i32_0 = arith.constant 0 : i32
    %c0_i32_1 = arith.constant 0 : i32
    return %c0_i32, %c0_i32_0 : i32, i32
  }
  func.func @transform_16(%arg0: i32) -> (i32, i32) {
    %c0_i32 = arith.constant 0 : i32
    %c0_i32_0 = arith.constant 0 : i32
    %c0_i32_1 = arith.constant 0 : i32
    return %c0_i32, %c0_i32_0 : i32, i32
  }
}

</mosaic_0001>

<bundles_post_ra>
// kernel: decoder_forward.1
= control target key start
LH: loop header
LB: loop body
LE: loop exit
PB: predicated region body
PF: predicated region fallthrough
CT: control target
= control target key end

     0   :  { %v1006_v0 = vmov 0.0   ;;  %vm1007_vm0 = vmmov 0   ;;  %vm70_vm1 = vcmask 261120   ;;  %vm389_vm2 = vcmask 1041409   ;;  %s1318_s5 = inlined_call_operand.vmem [shape: f32[32,32], index: 5, kind: input, shape index: {}]   ;;  %s1319_s4 = inlined_call_operand.vmem [shape: f32[32,32], index: 4, kind: input, shape index: {}]   ;;  %s1320_s2 = inlined_call_operand.vmem [shape: f32[8,8,32], index: 2, kind: input, shape index: {}]   ;;  %s1321_s1 = inlined_call_operand.vmem [shape: f32[8,32], index: 1, kind: input, shape index: {}]   ;;  %s1322_s6 = inlined_call_operand.vmem [shape: f32[1,32], index: 6, kind: input, shape index: {}]   ;;  %s1323_s7 = inlined_call_operand.vmem [shape: f32[1,32], index: 7, kind: input, shape index: {}]   ;;  %s1324_s3 = inlined_call_operand.vmem [shape: s32[8,8], index: 3, kind: input, shape index: {}]   ;;  %s1325_s16 = inlined_call_operand.vmem [shape: f32[8,128], index: 16, kind: output, shape index: {2}]   ;;  %s1326_s9 = inlined_call_operand.vmem [shape: f32[32,96], index: 9, kind: input, shape index: {}]   ;;  %s1327_s8 = inlined_call_operand.vmem [shape: f32[48,96], index: 8, kind: input, shape index: {}]   ;;  %s1328_s11 = inlined_call_operand.vmem [shape: f32[1,96], index: 11, kind: input, shape index: {}]   ;;  %s1329_s0 = inlined_call_operand.vmem [shape: f32[8,16], index: 0, kind: input, shape index: {}]   ;;  %s1330_s10 = inlined_call_operand.vmem [shape: f32[1,96], index: 10, kind: input, shape index: {}]   ;;  %s1331_s12 = inlined_call_operand.vmem [shape: bf16[32,128], index: 12, kind: input, shape index: {}]   ;;  %s1332_s15 = inlined_call_operand.vmem [shape: f32[8,128], index: 15, kind: output, shape index: {1}]   ;;  %s1333_s13 = inlined_call_operand.vmem [shape: f32[1,128], index: 13, kind: input, shape index: {}]   ;;  %s1334_s14 = inlined_call_operand.vmem [shape: f32[8,128], index: 14, kind: output, shape index: {0}]  }
   0x1   :  { %1336 = sst [smem:[#allocation3_spill]] %s1318_s5  ;;  %907 = vmatprep.subr.mxu0 %v1006_v0  ;;  %v69_v2 = vld [vmem:[%s1319_s4 + $0x18] sm:$0xff]  ;;  %915 = vmatprep.mubr.msk.f32.mxu0 %vm1007_vm0, %v1006_v0  ;;  %v68_v4 = vld [vmem:[%s1319_s4 + $0x10] sm:$0xff]  ;;  %v67_v6 = vld [vmem:[%s1319_s4 + $0x8] sm:$0xff]  ;;  %vm391_vm3 = vcmask 1042434   ;;  %vm393_vm4 = vcmask 1043459  }
   0x2   :  { %s1337_s23 = sld [smem:[#allocation3_spill]]  ;;  %908 = vmatpush3.msra.mxu0 %v69_v2  ;;  %v66_v8 = vld [vmem:[%s1319_s4] sm:$0xff]  ;;  %v1140_v11 = vld [vmem:[%s1320_s2 + $0x8] sm:$0xff]  ;;  %v1145_v12 = vld [vmem:[%s1320_s2 + $0x10] sm:$0xff]  ;;  %vm395_vm5 = vcmask 1044484   ;;  %vm397_vm6 = vcmask 1045509  }
   0x3   :  { %909 = vmatprep.subr.mxu0 %v1006_v0  ;;  %v1129_v9 = vld [vmem:[%s1320_s2] sm:$0xff]  ;;  %v1158_v13 = vld [vmem:[%s1320_s2 + $0x18] sm:$0xff]  ;;  %v1176_v15 = vld [vmem:[%s1320_s2 + $0x28] sm:$0xff]  ;;  %vm399_vm7 = vcmask 1046534   ;;  %vm401_vm8 = vcmask 1047559   ;;  %vm438_vm10 = vcmask 64512  }
   0x4   :  { %910 = vmatpush3.msra.mxu0 %v68_v4  ;;  %v1135_v10 = vld [vmem:[%s1321_s1] sm:$0xff]  ;;  %926 = vmatprep.mubr.msk.f32.mxu1 %vm70_vm1, %v1129_v9  ;;  %v1181_v16 = vld [vmem:[%s1320_s2 + $0x30] sm:$0xff]  ;;  %v1190_v17 = vld [vmem:[%s1320_s2 + $0x38] sm:$0xff]  ;;  %vm567_vm11 = vcmask 130048   ;;  %vm582_vm12 = vcmask 392192  }
   0x5   :  { %911 = vmatprep.subr.mxu0 %v1006_v0  ;;  %v1164_v14 = vld [vmem:[%s1320_s2 + $0x20] sm:$0xff] }
   0x6   :  { %912 = vmatpush3.msra.mxu0 %v67_v6  ;;  %v864_v20 = vld [vmem:[%s1322_s6] ss:$0 sm:$0xff] }
   0x7   :  { %913 = vmatprep.subr.mxu0 %v1006_v0  ;;  %v865_v44 = vld [vmem:[%s1323_s7] ss:$0 sm:$0xff] }
   0x8   :  { %v147_v1 = vld [vmem:[%s1337_s23 + $0x18] sm:$0xff]  ;;  %v146_v3 = vld [vmem:[%s1337_s23 + $0x10] sm:$0xff]  ;;  %v145_v5 = vld [vmem:[%s1337_s23 + $0x8] sm:$0xff]  ;;  %914 = vmatpush3.msra.mxu0 %v66_v8 }
   0x9   :  { %918 = vmatprep.subr.mxu1 %v147_v1  ;;  %v144_v7 = vld [vmem:[%s1337_s23] sm:$0xff]  ;;  %916 = vmatmul.mubr.msk.f32.vlgmr.msra.gmra.mxu0 %vm70_vm1, %v1135_v10  ;;  %s1009_s23 = smov 64  }
   0xa   :  { %919 = vmatpush3.msra.mxu1 %v147_v1  ;;  %938 = vmatprep.subr.mxu0 %v1006_v0 }
   0xb   :  { %920 = vmatprep.subr.mxu1 %v146_v3  ;;  %950 = vmatprep.mubr.msk.f32.mxu0 %vm1007_vm0, %v1006_v0 }
   0xc   :  { %921 = vmatpush3.msra.mxu1 %v146_v3 }
   0xd   :  { %922 = vmatprep.subr.mxu1 %v145_v5 }
   0xe   :  { %923 = vmatpush3.msra.mxu1 %v145_v5 }
   0xf   :  { %924 = vmatprep.subr.mxu1 %v144_v7 }
  0x10   :  { %925 = vmatpush3.msra.mxu1 %v144_v7  ;;  %v355_v7 = vlaneseq }
  0x11   :  { %927 = vmatmul.mubr.msk.f32.vlgmr.msra.gmra.mxu1 %vm70_vm1, %v1140_v11  ;;  %953 = vmatprep.subr.mxu1 %v1006_v0 }
  0x12   :  { %929 = vmatprep.mubr.msk.f32.mxu1 %vm70_vm1, %v1145_v12  ;;  %v356_v8 = vand.u32 127, %v355_v7 }
  0x15   :  { %930 = vmatmul.mubr.msk.f32.gmra.mxu1 %vm70_vm1, %v1158_v13 }
  0x16   :  { %932 = vmatprep.mubr.msk.f32.mxu1 %vm70_vm1, %v1164_v14 }
  0x19   :  { %933 = vmatmul.mubr.msk.f32.gmra.mxu1 %vm70_vm1, %v1176_v15 }
  0x1a   :  { %935 = vmatprep.mubr.msk.f32.mxu1 %vm70_vm1, %v1181_v16 }
  0x1d   :  { %936 = vmatmul.mubr.msk.f32.gmra.mxu1 %vm70_vm1, %v1190_v17 }
  0x1e   :  { %961 = vmatprep.mubr.msk.f32.mxu1 %vm1007_vm0, %v1006_v0 }
  0xc9   :  { %v140_v18 = vpop.f32.mrf.mxu0 }
  0xcb   :  { %v917_v23 = vpop.f32.mrf.mxu0 }
  0xd1   :  { %v928_v19 = vpop.f32.mrf.mxu1 }
  0xd2   :  { %v278_v21 = vadd.f32 %v928_v19, %v140_v18 }
  0xd3   :  { %v238_v22 = vpop.f32.mrf.mxu1 }
  0xd4   :  { %v293_v24 = vadd.f32 %v864_v20, %v278_v21  ;;  %v277_v25 = vadd.f32 %v238_v22, %v140_v18 }
  0xd5   :  { %v931_v26 = vpop.f32.mrf.mxu1 }
  0xd6   :  { %980 = vtanh.f32 %v293_v24  ;;  %v292_v27 = vadd.f32 %v864_v20, %v277_v25  ;;  %v280_v28 = vadd.f32 %v931_v26, %v140_v18 }
  0xd7   :  { %v248_v29 = vpop.f32.mrf.mxu1 }
  0xd8   :  { %982 = vtanh.f32 %v292_v27  ;;  %v295_v30 = vadd.f32 %v864_v20, %v280_v28  ;;  %v279_v31 = vadd.f32 %v248_v29, %v140_v18 }
  0xd9   :  { %v934_v32 = vpop.f32.mrf.mxu1 }
  0xda   :  { %984 = vtanh.f32 %v295_v30  ;;  %v294_v33 = vadd.f32 %v864_v20, %v279_v31  ;;  %v282_v34 = vadd.f32 %v934_v32, %v140_v18 }
  0xdb   :  { %v258_v35 = vpop.f32.mrf.mxu1 }
  0xdc   :  { %986 = vtanh.f32 %v294_v33  ;;  %v297_v36 = vadd.f32 %v864_v20, %v282_v34  ;;  %v281_v37 = vadd.f32 %v258_v35, %v140_v18 }
  0xdd   :  { %v937_v38 = vpop.f32.mrf.mxu1 }
  0xde   :  { %988 = vtanh.f32 %v297_v36  ;;  %v296_v39 = vadd.f32 %v864_v20, %v281_v37  ;;  %v284_v40 = vadd.f32 %v937_v38, %v140_v18 }
  0xdf   :  { %v268_v41 = vpop.f32.mrf.mxu1 }
  0xe0   :  { %990 = vtanh.f32 %v296_v39  ;;  %v299_v42 = vadd.f32 %v864_v20, %v284_v40  ;;  %v283_v43 = vadd.f32 %v268_v41, %v140_v18  ;;  %v1210_v18 = vshrl.u32 %v355_v7, 7 }
  0xe2   :  { %992 = vtanh.f32 %v299_v42  ;;  %v298_v45 = vadd.f32 %v864_v20, %v283_v43  ;;  %v359_v20 = vsub.s32 %v356_v8, %v1210_v18  ;;  %v65_v43 = vld [vmem:[%s1324_s3] sm:$0xff]  ;;  %v528_v7 = vsub.s32 6, %v1210_v18  ;;  %v659_v8 = vld [vmem:[%s1326_s9 + $0x18] sm:$0xff] }
  0xe3   :  { %v981_v46 = vpop.eup %980  ;;  %vm436_vm9 = vcmp.eq.s32.totalorder %v65_v43, 0  ;;  %954 = vmatpush3.msra.mxu1 %v659_v8 }
  0xe4   :  { %994 = vtanh.f32 %v298_v45  ;;  %v316_v47 = vmul.f32 %v981_v46, %v865_v44  ;;  %955 = vmatprep.subr.mxu1 %v1006_v0 }
  0xe5   :  { %v983_v48 = vpop.eup %982 }
  0xe6   :  { %v326_v49 = vsel %vm70_vm1, %v316_v47, 0.0  ;;  %v315_v50 = vmul.f32 %v983_v48, %v865_v44 }
  0xe7   :  { %v985_v51 = vpop.eup %984  ;;  %327 = vadd.xlane.f32.xlu0 %v326_v49 }
  0xe8   :  { %v318_v52 = vmul.f32 %v985_v51, %v865_v44  ;;  %v323_v55 = vsel %vm70_vm1, %v315_v50, 0.0 }
  0xe9   :  { %v987_v53 = vpop.eup %986 }
  0xea   :  { %v332_v54 = vsel %vm70_vm1, %v318_v52, 0.0  ;;  %v317_v56 = vmul.f32 %v987_v53, %v865_v44 }
  0xeb   :  { %v989_v57 = vpop.eup %988  ;;  %333 = vadd.xlane.f32.xlu1 %v332_v54  ;;  %324 = vadd.xlane.f32.xlu0 %v323_v55 }
  0xec   :  { %v329_v59 = vsel %vm70_vm1, %v317_v56, 0.0  ;;  %v320_v61 = vmul.f32 %v989_v57, %v865_v44  ;;  %v493_v56 = vsub.s32 1, %v1210_v18  ;;  %v486_v57 = vsub.s32 0, %v1210_v18 }
  0xed   :  { %v991_v58 = vpop.eup %990 }
  0xee   :  { %v319_v60 = vmul.f32 %v991_v58, %v865_v44  ;;  %v338_v2 = vsel %vm70_vm1, %v320_v61, 0.0  ;;  %v507_v61 = vsub.s32 3, %v1210_v18 }
  0xef   :  { %v993_v62 = vpop.eup %992  ;;  %330 = vadd.xlane.f32.xlu1 %v329_v59 }
  0xf0   :  { %v335_v63 = vsel %vm70_vm1, %v319_v60, 0.0  ;;  %v322_v4 = vmul.f32 %v993_v62, %v865_v44  ;;  %v500_v62 = vsub.s32 2, %v1210_v18 }
  0xf1   :  { %v995_v1 = vpop.eup %994  ;;  %336 = vadd.xlane.f32.xlu0 %v335_v63 }
  0xf2   :  { %v321_v3 = vmul.f32 %v995_v1, %v865_v44  ;;  %v344_v6 = vsel %vm70_vm1, %v322_v4, 0.0 }
  0xf3   :  { %339 = vadd.xlane.f32.xlu1 %v338_v2  ;;  %v521_v2 = vsub.s32 5, %v1210_v18 }
  0xf4   :  { %v341_v5 = vsel %vm70_vm1, %v321_v3, 0.0  ;;  %v514_v3 = vsub.s32 4, %v1210_v18 }
  0xf5   :  { %342 = vadd.xlane.f32.xlu0 %v341_v5 }
  0xf7   :  { %345 = vadd.xlane.f32.xlu1 %v344_v6  ;;  %v535_v6 = vsub.s32 7, %v1210_v18 }
 0x170   :  { %v328_v19 = vpop.xlane.xlu0 %327 }
 0x171   :  { %v364_v24 = vrot.slane %v328_v19, %v359_v20  ;;  %v658_v19 = vld [vmem:[%s1326_s9 + $0x10] sm:$0xff] }
 0x172   :  { %956 = vmatpush3.msra.mxu1 %v658_v19 }
 0x173   :  { %957 = vmatprep.subr.mxu1 %v1006_v0 }
 0x174   :  { %v334_v21 = vpop.xlane.xlu1 %333  ;;  %v325_v22 = vpop.xlane.xlu0 %324 }
 0x175   :  { %v360_v23 = vrot.slane %v325_v22, %v359_v20  ;;  %v372_v27 = vrot.slane %v334_v21, %v359_v20  ;;  %v573_v21 = vld [vmem:[%s1327_s8 + $0x20] sm:$0xff] }
 0x177   :  { %v390_v28 = vsel %vm389_vm2, %v364_v24, %v360_v23  ;;  %v657_v23 = vld [vmem:[%s1326_s9 + $0x8] sm:$0xff]  ;;  %v572_v24 = vld [vmem:[%s1327_s8 + $0x18] sm:$0xff] }
 0x178   :  { %v331_v25 = vpop.xlane.xlu1 %330  ;;  %958 = vmatpush3.msra.mxu1 %v657_v23 }
 0x179   :  { %v368_v26 = vrot.slane %v331_v25, %v359_v20  ;;  %v656_v25 = vld [vmem:[%s1326_s9] sm:$0xff]  ;;  %959 = vmatprep.subr.mxu1 %v1006_v0 }
 0x17a   :  { %v337_v29 = vpop.xlane.xlu0 %336  ;;  %960 = vmatpush3.msra.mxu1 %v656_v25 }
 0x17b   :  { %v392_v30 = vsel %vm391_vm3, %v368_v26, %v390_v28  ;;  %v376_v31 = vrot.slane %v337_v29, %v359_v20  ;;  %v571_v26 = vld [vmem:[%s1327_s8 + $0x10] sm:$0xff]  ;;  %962 = vmatmul.mubr.msk.f32.vlgmr.msra.gmra.mxu1 %vm70_vm1, %v1135_v10 }
 0x17c   :  { %v394_v32 = vsel %vm393_vm4, %v372_v27, %v392_v30  ;;  %v340_v33 = vpop.xlane.xlu1 %339  ;;  %v570_v27 = vld [vmem:[%s1327_s8 + $0x8] sm:$0xff] }
 0x17d   :  { %v396_v34 = vsel %vm395_vm5, %v376_v31, %v394_v32  ;;  %v380_v35 = vrot.slane %v340_v33, %v359_v20 }
 0x17e   :  { %v343_v36 = vpop.xlane.xlu0 %342 }
 0x17f   :  { %v384_v37 = vrot.slane %v343_v36, %v359_v20  ;;  %v398_v38 = vsel %vm397_vm6, %v380_v35, %v396_v34 }
 0x180   :  { %v346_v39 = vpop.xlane.xlu1 %345 }
 0x181   :  { %v388_v40 = vrot.slane %v346_v39, %v359_v20  ;;  %v400_v41 = vsel %vm399_vm7, %v384_v37, %v398_v38  ;;  %v574_v20 = vld [vmem:[%s1327_s8 + $0x28] sm:$0xff] }
 0x182   :  { %939 = vmatpush3.msra.mxu0 %v574_v20  ;;  %v978_v20 = vld [vmem:[%s1331_s12 + $0x8] sm:$0xff]  }
 0x183   :  { %v402_v42 = vsel %vm401_vm8, %v388_v40, %v400_v41  ;;  %940 = vmatprep.subr.mxu0 %v1006_v0  ;;  %v569_v40 = vld [vmem:[%s1327_s8] sm:$0xff]  ;;  %s1008_s8 = smov 16  }
 0x184   :  { %404 = vxpose.xlu0.b32.start.end [1/1] (short) (narrow) %v402_v42, 8  ;;  %941 = vmatpush3.msra.mxu0 %v573_v21  ;;  %v979_v21 = vld [vmem:[%s1331_s12] sm:$0xff]  }
 0x185   :  { %942 = vmatprep.subr.mxu0 %v1006_v0 }
 0x186   :  { %943 = vmatpush3.msra.mxu0 %v572_v24 }
 0x187   :  { %944 = vmatprep.subr.mxu0 %v1006_v0 }
 0x188   :  { %945 = vmatpush3.msra.mxu0 %v571_v26 }
 0x189   :  { %946 = vmatprep.subr.mxu0 %v1006_v0 }
 0x18a   :  { %947 = vmatpush3.msra.mxu0 %v570_v27 }
 0x18b   :  { %948 = vmatprep.subr.mxu0 %v1006_v0 }
 0x18c   :  { %949 = vmatpush3.msra.mxu0 %v569_v40 }
 0x18d   :  { %964 = vmatprep.subr.bf16.mxu0 %v1006_v0 }
 0x200   :  { %v420_v44 = vpop.trf.xlu0 }
 0x201   :  { %v437_v45 = vsel %vm436_vm9, -1e+10, %v420_v44 }
 0x202   :  { %v439_v46 = vsel %vm438_vm10, %v437_v45, -inf }
 0x203   :  { %440 = vmax.xlane.f32.xlu1 %v439_v46 }
 0x28c   :  { %v441_v47 = vpop.xlane.xlu1 %440 }
 0x28d   :  { %v442_v48 = vsub.f32 %v437_v45, %v441_v47 }
 0x28f   :  { %v443_v49 = vmul.f32 1.442695, %v442_v48 }
 0x291   :  { %996 = vpow2.f32 %v443_v49 }
 0x29e   :  { %v997_v50 = vpop.eup %996 }
 0x29f   :  { %v445_v51 = vsel %vm438_vm10, %v997_v50, 0.0 }
 0x2a0   :  { %446 = vadd.xlane.f32.xlu1 %v445_v51 }
 0x329   :  { %v447_v52 = vpop.xlane.xlu1 %446 }
 0x32a   :  { %998 = vrcp.f32 %v447_v52 }
 0x337   :  { %v999_v53 = vpop.eup %998 }
 0x338   :  { %v449_v54 = vmul.f32 %v999_v53, %v997_v50 }
 0x33a   :  { %452 = vxpose.xlu1.b32.start.end [1/1] (short) (narrow) %v449_v54, 8  ;;  %v450_v55 = vsel %vm438_vm10, %v449_v54, 0.0  ;;  %v868_v54 = vld [vmem:[%s1328_s11] ss:$0 sm:$0xff] }
 0x33b   :  { %451 = vst [vmem:[%s1325_s16] sm:$0xff] %v450_v55  ;;  %v733_v55 = vpop.f32.mrf.mxu1 }
 0x3b6   :  { %v468_v58 = vpop.trf.xlu1 }
 0x3b7   :  { %v494_v59 = vrot.slane %v468_v58, %v493_v56  ;;  %v487_v60 = vrot.slane %v468_v58, %v486_v57  ;;  %v508_v63 = vrot.slane %v468_v58, %v507_v61  ;;  %v501_v1 = vrot.slane %v468_v58, %v500_v62  ;;  %v963_v57 = vpop.f32.mrf.mxu1 }
 0x3b8   :  { %v522_v4 = vrot.slane %v468_v58, %v521_v2  ;;  %v515_v5 = vrot.slane %v468_v58, %v514_v3  ;;  %v536_v18 = vrot.slane %v468_v58, %v535_v6  ;;  %v529_v22 = vrot.slane %v468_v58, %v528_v7 }
 0x3b9   :  { %496 = vbcast.lane.b32.xlu1 %v494_v59, 256  ;;  %489 = vbcast.lane.b32.xlu0 %v487_v60, 256  ;;  %v734_v56 = vadd.f32 %v868_v54, %v733_v55  ;;  %v866_v59 = vld [vmem:[%s1330_s10] ss:$0 sm:$0xff]  ;;  %s1011_s10 = smov 96  }
 0x3bd   :  { %510 = vbcast.lane.b32.xlu1 %v508_v63, 256  ;;  %503 = vbcast.lane.b32.xlu0 %v501_v1, 256 }
 0x3c1   :  { %524 = vbcast.lane.b32.xlu1 %v522_v4, 256  ;;  %517 = vbcast.lane.b32.xlu0 %v515_v5, 256 }
 0x3c5   :  { %538 = vbcast.lane.b32.xlu1 %v536_v18, 256  ;;  %531 = vbcast.lane.b32.xlu0 %v529_v22, 256 }
 0x3c9   :  { %745 = vrot.lane.b32.xlu1 %v734_v56, %s1009_s23 }
 0x42b   :  { %v497_v28 = vpop.permute.xlu1 %496  ;;  %v490_v29 = vpop.permute.xlu0 %489 }
 0x42c   :  { %v541_v30 = vmul.f32 %v497_v28, %v1140_v11  ;;  %v540_v31 = vmul.f32 %v490_v29, %v1129_v9 }
 0x42e   :  { %v549_v32 = vsel %vm70_vm1, %v541_v30, 0.0  ;;  %v548_v33 = vsel %vm70_vm1, %v540_v31, 0.0 }
 0x42f   :  { %v511_v34 = vpop.permute.xlu1 %510  ;;  %v504_v35 = vpop.permute.xlu0 %503  ;;  %v550_v38 = vadd.f32 %v549_v32, %v548_v33 }
 0x430   :  { %v543_v36 = vmul.f32 %v511_v34, %v1158_v13  ;;  %v542_v37 = vmul.f32 %v504_v35, %v1145_v12 }
 0x432   :  { %v551_v39 = vsel %vm70_vm1, %v542_v37, 0.0  ;;  %v553_v42 = vsel %vm70_vm1, %v543_v36, 0.0 }
 0x433   :  { %v552_v11 = vadd.f32 %v551_v39, %v550_v38  ;;  %v525_v41 = vpop.permute.xlu1 %524  ;;  %v518_v9 = vpop.permute.xlu0 %517 }
 0x434   :  { %v545_v43 = vmul.f32 %v525_v41, %v1176_v15  ;;  %v544_v44 = vmul.f32 %v518_v9, %v1164_v14 }
 0x435   :  { %v554_v12 = vadd.f32 %v553_v42, %v552_v11 }
 0x436   :  { %v555_v13 = vsel %vm70_vm1, %v544_v44, 0.0  ;;  %v557_v48 = vsel %vm70_vm1, %v545_v43, 0.0 }
 0x437   :  { %v556_v45 = vadd.f32 %v555_v13, %v554_v12  ;;  %v539_v46 = vpop.permute.xlu1 %538  ;;  %v532_v47 = vpop.permute.xlu0 %531 }
 0x438   :  { %v547_v49 = vmul.f32 %v539_v46, %v1190_v17  ;;  %v546_v50 = vmul.f32 %v532_v47, %v1181_v16  ;;  %v55_v16 = vld [vmem:[%s1329_s0] sm:$0xff]  ;;  %s1010_s0 = smov 32  }
 0x439   :  { %v558_v51 = vadd.f32 %v557_v48, %v556_v45 }
 0x43a   :  { %v559_v52 = vsel %vm70_vm1, %v546_v50, 0.0  ;;  %v561_v14 = vsel %vm70_vm1, %v547_v49, 0.0 }
 0x43b   :  { %v560_v15 = vadd.f32 %v559_v52, %v558_v51  ;;  %v746_v4 = vpop.permute.xlu1 %745 }
 0x43d   :  { %v562_v53 = vadd.f32 %v561_v14, %v560_v15 }
 0x43f   :  { %564 = vrot.lane.b32.xlu0 %v562_v53, %s1008_s8 }
 0x4b1   :  { %v565_v17 = vpop.permute.xlu0 %564 }
 0x4b2   :  { %v568_v58 = vsel %vm567_vm11, %v55_v16, %v565_v17 }
 0x4b3   :  { %951 = vmatmul.mubr.msk.f32.vlgmr.msra.gmra.mxu0 %vm582_vm12, %v568_v58 }
 0x4b4   :  { %968 = vmatprep.mubr.msk.bf16.mxu0 %vm1007_vm0, %v1006_v0  ;;  %965 = vmatpush3.bf16.msra.mxu0 %v978_v20 }
 0x4b5   :  { %966 = vmatprep.subr.bf16.mxu0 %v1006_v0  ;;  %v871_v0 = vld [vmem:[%s1333_s13] ss:$0 sm:$0xff] }
 0x4b8   :  { %967 = vmatpush3.bf16.msra.mxu0 %v979_v21 }
 0x573   :  { %v652_v60 = vpop.f32.mrf.mxu0 }
 0x574   :  { %v653_v61 = vadd.f32 %v866_v59, %v652_v60 }
 0x575   :  { %v952_v62 = vpop.f32.mrf.mxu0 }
 0x576   :  { %v737_v63 = vadd.f32 %v734_v56, %v653_v61 }
 0x578   :  { %v870_v1 = vmul.f32 -1.442695, %v737_v63 }
 0x57a   :  { %1000 = vpow2.f32 %v870_v1 }
 0x587   :  { %v1001_v2 = vpop.eup %1000 }
 0x588   :  { %v741_v3 = vadd.f32 1.0, %v1001_v2 }
 0x58a   :  { %1002 = vrcp.f32 %v741_v3 }
 0x597   :  { %v1003_v5 = vpop.eup %1002 }
 0x598   :  { %v748_v6 = vmul.f32 %v1003_v5, %v746_v4  ;;  %v755_v22 = vsub.f32 1.0, %v1003_v5 }
 0x59a   :  { %750 = vrot.lane.b32.xlu0 %v748_v6, %s1009_s23 }
 0x59e   :  { %761 = vrot.lane.b32.xlu0 %v1135_v10, %s1010_s0 }
 0x60c   :  { %v751_v7 = vpop.permute.xlu0 %750 }
 0x60d   :  { %v753_v8 = vadd.f32 %v751_v7, %v653_v61 }
 0x60f   :  { %1004 = vtanh.f32 %v753_v8 }
 0x610   :  { %v762_v18 = vpop.permute.xlu0 %761 }
 0x611   :  { %v764_v23 = vmul.f32 %v1003_v5, %v762_v18 }
 0x61c   :  { %v1005_v19 = vpop.eup %1004 }
 0x61d   :  { %757 = vrot.lane.b32.xlu1 %v1005_v19, %s1011_s10 }
 0x68f   :  { %v758_v10 = vpop.permute.xlu1 %757 }
 0x690   :  { %v760_v24 = vmul.f32 %v758_v10, %v755_v22 }
 0x692   :  { %v765_v25 = vadd.f32 %v764_v23, %v760_v24 }
 0x694   :  { %767 = vrot.lane.b32.xlu1 %v765_v25, %s1011_s10 }
 0x706   :  { %v768_v26 = vpop.permute.xlu1 %767 }
 0x707   :  { %770 = vst.msk [vmem:[#allocation2] sm:$0xff] %vm70_vm1, %v768_v26  ;;  %v771_v27 = vsel %vm70_vm1, %v768_v26, 0.0 }
 0x708   :  { %772 = vst [vmem:[%s1332_s15] sm:$0xff] %v771_v27 }
 0x70e   :  { %v773_v28 = vld [vmem:[#allocation2] sm:$0xff] }
 0x70f   :  { %v774_v29 = vpack.c.bf16 %v773_v28, %v773_v28 }
 0x711   :  { %969 = vmatmul.mubr.msk.bf16.vlgmr.msra.gmra.mxu0 %vm70_vm1, %v774_v29 }
 0x7d1   :  { %v836_v30 = vpop.f32.mrf.mxu0 }
 0x7d2   :  { %v837_v31 = vadd.f32 %v871_v0, %v836_v30 }
 0x7d3   :  { %v970_v32 = vpop.f32.mrf.mxu0 }
 0x7d4   :  { %842 = vst [vmem:[%s1334_s14] sm:$0xff] %v837_v31 }
 0x7d5   :  { %v839_v33 = vpop.f32.mrf.mxu0 }
 0x7d7   :  { %v971_v34 = vpop.f32.mrf.mxu0 }

</bundles_post_ra>
